<compile_context>
chip_gen: v6e
topology: v6e:2x2x1
jax: 0.10.0
libtpu: 0.0.40
codegen_flags: <defaults>
</compile_context>

<pallas_src>
import functools
import math

import jax
import jax.numpy as jnp
import numpy as np
from jax import lax
from jax.experimental import pallas as pl
from jax.experimental.pallas import tpu as pltpu

DEFAULT_TEMPERATURE = 0.5
_EPS = 1e-12  # matches torch.nn.functional.normalize default


def _l2_normalize(x):
    """Row-wise L2 normalization, equivalent to x / max(||x||, eps)."""
    ss = jnp.sum(x * x, axis=1, keepdims=True)
    return x * lax.rsqrt(jnp.maximum(ss, _EPS * _EPS))


def _round_up(x, m):
    return ((x + m - 1) // m) * m


def _selfsupcon_kernel(q_ref, k_ref, pos_ref, loss_ref, acc_ref, *, sub_const):
    """One (row_block, key_block) tile of the 2N x 2N contrastive loss.

    q_ref   : (tr, C)  pre-normalized query rows, 1/T already folded in.
    k_ref   : (tk, C)  pre-normalized key rows.
    pos_ref : (tr, 1)  exact f32 positive logit  (zn_i . zan_i) / T.
    loss_ref: (tr, 128) f32 per-row loss broadcast across lanes (dense stores).
    acc_ref : (tr, 1)  f32 running row-sum of exp(S).
    sub_const: exp(1/T) (the excluded diagonal) + #zero-padded key rows
               (each contributes exp(0) = 1), removed once at finalize.
    """
    kb = pl.program_id(1)
    nk = pl.num_programs(1)

    @pl.when(kb == 0)
    def _init():
        acc_ref[...] = jnp.zeros_like(acc_ref)

    # MXU: q @ k^T via dot_general contracting the last dims (no transpose
    # materialized). No elementwise temperature passes — 1/T is in q already.
    s = lax.dot_general(
        q_ref[...], k_ref[...],
        dimension_numbers=(((1,), (1,)), ((), ())),
        preferred_element_type=jnp.float32)                     # (tr, tk) f32

    # |s| <= 1/T for unit-norm rows, so un-shifted exp is safe in f32 for any
    # temperature down to ~0.02 (re-introduce a max-shift below that).
    acc_ref[...] += jnp.sum(jnp.exp(s), axis=1, keepdims=True)

    @pl.when(kb == nk - 1)
    def _finalize():
        denom = acc_ref[...] - sub_const          # drop diagonal + padded keys
        loss = jnp.log(denom) - pos_ref[...]      # -log softmax at the positive
        # Lane-dense (last dim 128) write -> unmasked vector stores.
        loss_ref[...] = jnp.broadcast_to(loss, loss_ref.shape).astype(
            loss_ref.dtype)


def selfsupcon_loss(z, z_aug, *, temperature=DEFAULT_TEMPERATURE,
                    reduction="mean", tile_r=256, tile_k=1024,
                    mxu_dtype=jnp.bfloat16, vmem_limit_bytes=None):
    """Self-supervised contrastive (NT-Xent) loss via a Pallas TPU kernel."""
    n, c = z.shape
    n2 = 2 * n
    inv_temp = float(1.0 / temperature)

    # ---- single fused O(2N*C) prep pass: normalize, fold 1/T, cast ---------
    zn = _l2_normalize(z.astype(jnp.float32))
    zan = _l2_normalize(z_aug.astype(jnp.float32))
    w = jnp.concatenate([zn, zan], axis=0)                 # (2N, C) unit rows
    # Exact positive logit in f32 (row i and row i+N share the same value).
    pos = jnp.sum(zn * zan, axis=1) * inv_temp             # (N,)
    pos2 = jnp.concatenate([pos, pos])[:, None]            # (2N, 1) f32
    q = (w * inv_temp).astype(mxu_dtype)                   # queries, 1/T folded
    k = w.astype(mxu_dtype)                                # keys

    # ---- tile selection + padding (never fall back to a full-size block) ---
    tr = max(8, min(int(tile_r), _round_up(n2, 8)))
    tr = _round_up(tr, 8)
    tk = max(128, min(int(tile_k), _round_up(n2, 128)))
    tk = _round_up(tk, 128)
    n2p = _round_up(n2, math.lcm(tr, tk))
    # v7x megacore: keep >= 2 blocks on the "parallel" row axis when possible.
    if n2p // tr < 2 and tr % 16 == 0:
        tr //= 2
    nbr = n2p // tr
    nbk = n2p // tk

    pad = n2p - n2
    if pad:
        q = jnp.pad(q, ((0, pad), (0, 0)))
        k = jnp.pad(k, ((0, pad), (0, 0)))
        pos2 = jnp.pad(pos2, ((0, pad), (0, 0)))

    # Diagonal term (s_ii == 1/T for unit rows) + padded key columns (zero
    # rows give exp(0) = 1 each), removed as one constant at finalize.
    sub_const = float(np.exp(inv_temp)) + float(pad)

    kernel = functools.partial(_selfsupcon_kernel, sub_const=sub_const)

    # ---- VMEM budget: double-buffered blocks + f32 tile temporaries --------
    itemsize = jnp.dtype(mxu_dtype).itemsize
    vmem_req = (2 * (tr * c + tk * c) * itemsize        # q / k double buffers
                + 2 * tr * 4 + 2 * tr * 128 * 4         # pos + output blocks
                + 2 * tr * tk * 4 + tr * 4              # s / exp temps + acc
                + (4 << 20))                            # headroom
    if vmem_limit_bytes is None:
        # 56 MiB leaves >= 8 MiB headroom even on v7x's 64 MiB physical VMEM;
        # pass a larger limit explicitly on v5e/v6e (128 MiB) for bigger tiles.
        vmem_limit_bytes = int(min(max(vmem_req, 32 << 20), 56 << 20))

    out = pl.pallas_call(
        kernel,
        out_shape=jax.ShapeDtypeStruct((n2p, 128), jnp.float32),
        grid=(nbr, nbk),
        in_specs=[
            pl.BlockSpec((tr, c), lambda i, j: (i, 0)),   # query rows
            pl.BlockSpec((tk, c), lambda i, j: (j, 0)),   # key rows (re-streamed)
            pl.BlockSpec((tr, 1), lambda i, j: (i, 0)),   # exact positive logits
        ],
        out_specs=pl.BlockSpec((tr, 128), lambda i, j: (i, 0)),
        scratch_shapes=[pltpu.VMEM((tr, 1), jnp.float32)],
        compiler_params=pltpu.CompilerParams(
            dimension_semantics=("parallel", "arbitrary"),
            vmem_limit_bytes=vmem_limit_bytes,
        ),
        cost_estimate=pl.CostEstimate(
            flops=2 * n2p * n2p * c,
            transcendentals=n2p * n2p,
            # Keys are re-streamed once per row block; queries/pos/output once.
            bytes_accessed=(nbr * n2p * c + n2p * c) * itemsize
                           + n2p * 4 + n2p * 128 * 4,
        ),
    )(q, k, pos2)

    per_row = out[:n2, 0]   # drop padded rows before any reduction
    return jnp.mean(per_row) if reduction == "mean" else per_row


def _reference_numpy(z, z_aug, temp=DEFAULT_TEMPERATURE, reduction="mean"):
    """Pure-numpy port of the PyTorch forward, for validation."""
    z = np.asarray(z, np.float32)
    za = np.asarray(z_aug, np.float32)
    zn = z / np.maximum(np.linalg.norm(z, axis=1, keepdims=True), 1e-12)
    zan = za / np.maximum(np.linalg.norm(za, axis=1, keepdims=True), 1e-12)
    w = np.concatenate([zn, zan], axis=0)
    s = w @ w.T / temp
    e = np.exp(s)
    np.fill_diagonal(e, 0.0)
    sfx = e / e.sum(axis=1, keepdims=True)
    n = z.shape[0]
    pos = np.concatenate([np.arange(n) + n, np.arange(n)])
    loss = -np.log(sfx[np.arange(2 * n), pos])
    return loss.mean() if reduction == "mean" else loss


if __name__ == "__main__":
    key = jax.random.PRNGKey(0)
    k1, k2, k3, k4 = jax.random.split(key, 4)

    # Case 1: small, bf16 MXU feed, default tiles. 2N=16 is padded up to a
    # 128-wide key tile (exercises the padding constant + single-key-block
    # init/finalize on the same step), reduction='mean'.
    N, C = 8, 32
    z = jax.random.normal(k1, (N, C), dtype=jnp.float32)
    z_aug = z + 0.1 * jax.random.normal(k2, (N, C), dtype=jnp.float32)
    loss = jax.block_until_ready(selfsupcon_loss(z, z_aug))
    ref = _reference_numpy(np.asarray(z), np.asarray(z_aug))
    assert np.allclose(float(loss), ref, rtol=3e-2, atol=3e-2), (float(loss), ref)

    # Case 2: awkward batch (2N=200 padded to 256), f32 MXU feed, 4x2 grid
    # (exercises multi-key-block accumulation + diagonal/padding constant),
    # reduction='none'.
    N2, C2 = 100, 64
    z2 = jax.random.normal(k3, (N2, C2), dtype=jnp.float32)
    z2_aug = z2 + 0.05 * jax.random.normal(k4, (N2, C2), dtype=jnp.float32)
    per_row = jax.block_until_ready(
        selfsupcon_loss(z2, z2_aug, reduction="none", tile_r=64, tile_k=128,
                        mxu_dtype=jnp.float32))
    ref2 = _reference_numpy(np.asarray(z2), np.asarray(z2_aug), reduction="none")
    assert np.allclose(np.asarray(per_row), ref2, rtol=5e-3, atol=5e-3), \
        float(np.abs(np.asarray(per_row) - ref2).max())

    print("KERNEL_OK")
</pallas_src>

<mosaic_0001>
module attributes {stable_mosaic.version = 11 : i64} {
  func.func @_selfsupcon_kernel(%arg0: i32, %arg1: i32, %arg2: memref<16x32xbf16, #tpu.memory_space<vmem>>, %arg3: memref<128x32xbf16, #tpu.memory_space<vmem>>, %arg4: memref<16x1xf32, #tpu.memory_space<vmem>>, %arg5: memref<16x128xf32, #tpu.memory_space<vmem>>, %arg6: memref<16x1xf32, #tpu.memory_space<vmem>>) attributes {dimension_semantics = [#tpu.dimension_semantics<parallel>, #tpu.dimension_semantics<arbitrary>], iteration_bounds = array<i64: 8, 1>, scalar_prefetch = 0 : i64, scratch_operands = 1 : i64, tpu.core_type = #tpu.core_type<tc>, window_params = [{transform_indices = @transform_0, window_bounds = array<i64: 16, 32>}, {transform_indices = @transform_1, window_bounds = array<i64: 128, 32>}, {transform_indices = @transform_2, window_bounds = array<i64: 16, 1>}, {transform_indices = @transform_3, window_bounds = array<i64: 16, 128>}]} {
    %c0_i32 = arith.constant 0 : i32
    %0 = arith.cmpi eq, %arg1, %c0_i32 : i32
    %1 = arith.extui %0 : i1 to i32
    %c0_i32_0 = arith.constant 0 : i32
    %2 = arith.cmpi ne, %1, %c0_i32_0 : i32
    scf.if %2 {
      %cst_11 = arith.constant 0.000000e+00 : f32
      %15 = vector.broadcast %cst_11 : f32 to vector<16x1xf32>
      %c0_12 = arith.constant 0 : index
      %c0_13 = arith.constant 0 : index
      %16 = vector.load %arg6[%c0_12, %c0_13] : memref<16x1xf32, #tpu.memory_space<vmem>>, vector<16x1xf32>
      tpu.vector_store %arg6[%c0_12, %c0_13], %15 {strides = array<i32>} : memref<16x1xf32, #tpu.memory_space<vmem>>, vector<16x1xf32>,
    } else {
    }
    %c0 = arith.constant 0 : index
    %c0_1 = arith.constant 0 : index
    %3 = vector.load %arg2[%c0, %c0_1] : memref<16x32xbf16, #tpu.memory_space<vmem>>, vector<16x32xbf16>
    %c0_2 = arith.constant 0 : index
    %c0_3 = arith.constant 0 : index
    %4 = vector.load %arg3[%c0_2, %c0_3] : memref<128x32xbf16, #tpu.memory_space<vmem>>, vector<128x32xbf16>
    %cst = arith.constant dense<0.000000e+00> : vector<16x128xf32>
    %5 = tpu.matmul %3, %4, %cst {dimension_numbers = #tpu.dot_dimension_numbers<[1], [1], [0], [0], [0, 0, 1, 0], [], []>} : vector<16x32xbf16>, vector<128x32xbf16>, vector<16x128xf32> -> vector<16x128xf32>
    %c0_4 = arith.constant 0 : index
    %c0_5 = arith.constant 0 : index
    %6 = vector.load %arg6[%c0_4, %c0_5] : memref<16x1xf32, #tpu.memory_space<vmem>>, vector<16x1xf32>
    %7 = math.exp %5 : vector<16x128xf32>
    %cst_6 = arith.constant dense<0.000000e+00> : vector<16xf32>
    %8 = vector.multi_reduction <add>, %7, %cst_6 [1] : vector<16x128xf32> to vector<16xf32>
    %9 = vector.shape_cast %8 : vector<16xf32> to vector<16x1xf32>
    %10 = arith.addf %6, %9 : vector<16x1xf32>
    %c0_7 = arith.constant 0 : index
    %c0_8 = arith.constant 0 : index
    %11 = vector.load %arg6[%c0_7, %c0_8] : memref<16x1xf32, #tpu.memory_space<vmem>>, vector<16x1xf32>
    tpu.vector_store %arg6[%c0_7, %c0_8], %10 {strides = array<i32>} : memref<16x1xf32, #tpu.memory_space<vmem>>, vector<16x1xf32>,
    %c0_i32_9 = arith.constant 0 : i32
    %12 = arith.cmpi eq, %arg1, %c0_i32_9 : i32
    %13 = arith.extui %12 : i1 to i32
    %c0_i32_10 = arith.constant 0 : i32
    %14 = arith.cmpi ne, %13, %c0_i32_10 : i32
    scf.if %14 {
      %c0_11 = arith.constant 0 : index
      %c0_12 = arith.constant 0 : index
      %15 = vector.load %arg6[%c0_11, %c0_12] : memref<16x1xf32, #tpu.memory_space<vmem>>, vector<16x1xf32>
      %cst_13 = arith.constant 119.389053 : f32
      %16 = vector.broadcast %cst_13 : f32 to vector<16x1xf32>
      %17 = arith.subf %15, %16 : vector<16x1xf32>
      %18 = math.log %17 : vector<16x1xf32>
      %c0_14 = arith.constant 0 : index
      %c0_15 = arith.constant 0 : index
      %19 = vector.load %arg4[%c0_14, %c0_15] : memref<16x1xf32, #tpu.memory_space<vmem>>, vector<16x1xf32>
      %20 = arith.subf %18, %19 : vector<16x1xf32>
      %21 = vector.shape_cast %20 : vector<16x1xf32> to vector<16x1xf32>
      %22 = vector.broadcast %21 : vector<16x1xf32> to vector<16x128xf32>
      %c0_16 = arith.constant 0 : index
      %c0_17 = arith.constant 0 : index
      %23 = vector.load %arg5[%c0_16, %c0_17] : memref<16x128xf32, #tpu.memory_space<vmem>>, vector<16x128xf32>
      tpu.vector_store %arg5[%c0_16, %c0_17], %22 {strides = array<i32>} : memref<16x128xf32, #tpu.memory_space<vmem>>, vector<16x128xf32>,
    } else {
    }
    return
  }
  func.func @transform_0(%arg0: i32, %arg1: i32) -> (i32, i32) {
    %c0_i32 = arith.constant 0 : i32
    %c0_i32_0 = arith.constant 0 : i32
    return %arg0, %c0_i32 : i32, i32
  }
  func.func @transform_1(%arg0: i32, %arg1: i32) -> (i32, i32) {
    %c0_i32 = arith.constant 0 : i32
    %c0_i32_0 = arith.constant 0 : i32
    return %arg1, %c0_i32 : i32, i32
  }
  func.func @transform_2(%arg0: i32, %arg1: i32) -> (i32, i32) {
    %c0_i32 = arith.constant 0 : i32
    %c0_i32_0 = arith.constant 0 : i32
    return %arg0, %c0_i32 : i32, i32
  }
  func.func @transform_3(%arg0: i32, %arg1: i32) -> (i32, i32) {
    %c0_i32 = arith.constant 0 : i32
    %c0_i32_0 = arith.constant 0 : i32
    return %arg0, %c0_i32 : i32, i32
  }
}

</mosaic_0001>

<bundles_post_ra>
// kernel: tpu_custom_call.1
= control target key start
LH: loop header
LB: loop body
LE: loop exit
PB: predicated region body
PF: predicated region fallthrough
CT: control target
= control target key end

     0   :  { %8 = vsyncpa [#allocation4], 0  ;;  %s919_s0 = inlined_call_operand.vmem [shape: bf16[128,32], index: 0, kind: input, shape index: {}]   ;;  %s920_s1 = inlined_call_operand.vmem [shape: bf16[128,32], index: 1, kind: input, shape index: {}]   ;;  %s921_s2 = inlined_call_operand.vmem [shape: f32[128,1], index: 2, kind: input, shape index: {}]   ;;  %s922_s3 = inlined_call_operand.hbm [shape: f32[128,128], index: 3, kind: output, shape index: {}]  }
   0x1   :  { %10 = vsyncpa [#allocation4 + $0x1], 0  ;;  %s762_s12 = smov 0   ;;  %s764_s13 = smov 0  }
   0x2   :  { %s766_s14 = smov 0   ;;  %s768_s15 = smov 0  }
   0x3   :  { %s770_s16 = smov 0   ;;  %s772_s17 = smov 0  }
   0x4 LB: > { %s521_s18 = sadd.s32 4294967295, %s734_s17   ;;  %s522_s19 = sadd.s32 4294967294, %s734_s17   ;;  %s734_s17 = sphi %s772_s17, %s16_s17   ;;  %s730_s16 = sphi %s770_s16, %s929_s16   ;;  %s726_s15 = sphi %s768_s15, %s928_s15   ;;  %s722_s14 = sphi %s766_s14, %s927_s14   ;;  %s718_s13 = sphi %s764_s13, %s926_s13   ;;  %s714_s12 = sphi %s762_s12, %s925_s12  }
   0x5   : > { %s28_s20 = sadd.s32 1, %s730_s16  ;;  %s113_s21 = sadd.s32 1, %s722_s14 }
   0x6   : > { %p30_p0 = scmp.ge.s32.totalorder %s28_s20, 8  ;;  %p123_p1 = scmp.ne.s32.totalorder %s722_s14, %s718_s13 }
   0x7   : > { %p124_p2 = scmp.eq.s32.totalorder %s521_s18, 7  ;;  %p129_p3 = scmp.ne.s32.totalorder %s718_s13, %s714_s12 }
   0x8   : > { %s931_s20 = smov (%p30_p0, %s28_s20), 0  ;;  %p130_p5 = scmp.eq.s32.totalorder %s522_s19, 7 }
   0x9   : > { %p802_p4 = por %p124_p2, %p123_p1  ;;  %s110_s23 = ssub.s32 %s730_s16, %s931_s20 }
   0xa   : > { %p526_p6 = scmp.ge.s32.totalorder %s734_s17, 1  ;;  %p111_p7 = scmp.eq.s32.totalorder %s110_s23, 0 }
   0xb   : > { %p809_p8 = por %p130_p5, %p129_p3  ;;  %p175_p9 = scmp.lt.s32.totalorder %s734_s17, 9 }
   0xc   : > { %s815_s25 = scalar_select %p111_p7, %s722_s14, %s113_s21  }
   0xd   : > { %p176_p10 = pnand %p526_p6, %p175_p9 }
   0xe   : > { %s528_s30 = sshll.u32 (!%p176_p10), %s726_s15, 1  ;;  %s206_s8 = sand.u32 (!%p176_p10), 1, %s718_s13  }
   0xf   : > { %179 = sbr.rel (%p176_p10) target bundleno = 604 (0x25c), region = 32  ;;  %p210_p11 = scmp.lt.s32.totalorder (!%p176_p10), %s528_s30, 15 }
  0x10   : > { %s549_s11 = sshll.u32 (!%p176_p10), %s726_s15, 8  ;;  %s874_s23 = scalar_lea.sflag (!%p176_p10), [#allocation4], %s206_s8 }
  0x11   : > { %s872_s21 = scalar_lea.hbm (!%p176_p10), %s922_s3, %s549_s11  ;;  %s739_s15 = smov (!%p176_p10), [#allocation3]  }
  0x12   : > { %s662_s27 = sshll.u32 (!%p176_p10), %s739_s15, 4  ;;  %s663_s27 = int_to_ptr.vmem [resolvable:$false] %s662_s27 }
  0x13   : > { %s664_s28 = scalar_lea.vmem (!%p176_p10), %s663_s27, 512 }
  0x14   : > { %v641_v0 = vld [vmem:[%s920_s1 + $0x38] sm:$0xff]   ;;  %v736_v1 = vmov 0.0   ;;  %vm299_vm0 = vcmask 261120   ;;  %v642_v3 = vld [vmem:[%s920_s1 + $0x30] sm:$0xff]   ;;  %vm737_vm1 = vmmov 0   ;;  %s933_s30 = smov (!%p210_p11, %s528_s30), 15 }
  0x15   : > { %559 = vmatprep.subr.bf16.mxu0 %v736_v1  ;;  %v325_v2 = vsel %vm299_vm0, %v641_v0, 0  ;;  %v322_v4 = vsel %vm299_vm0, %v642_v3, 0  ;;  %575 = vmatprep.mubr.msk.bf16.mxu0 %vm737_vm1, %v736_v1  ;;  %v643_v5 = vld [vmem:[%s920_s1 + $0x28] sm:$0xff]   ;;  %s529_s6 = sshll.u32 %s933_s30, 2  ;;  %v644_v7 = vld [vmem:[%s920_s1 + $0x20] sm:$0xff]   ;;  %v645_v9 = vld [vmem:[%s920_s1 + $0x18] sm:$0xff]  }
  0x16   : > { %560 = vmatpush3.bf16.xpose.msra.mxu0 %v325_v2  ;;  %s213_s9 = scalar_lea.vmem %s919_s0, %s529_s6  ;;  %v319_v6 = vsel %vm299_vm0, %v643_v5, 0  ;;  %v316_v8 = vsel %vm299_vm0, %v644_v7, 0  ;;  %v313_v10 = vsel %vm299_vm0, %v645_v9, 0  ;;  %v646_v11 = vld [vmem:[%s920_s1 + $0x10] sm:$0xff]   ;;  %v647_v13 = vld [vmem:[%s920_s1 + $0x8] sm:$0xff]   ;;  %v648_v15 = vld [vmem:[%s920_s1] sm:$0xff]  }
  0x17   : > { %561 = vmatprep.subr.bf16.mxu0 %v736_v1  ;;  %v310_v12 = vsel %vm299_vm0, %v646_v11, 0  ;;  %v307_v14 = vsel %vm299_vm0, %v647_v13, 0  ;;  %v304_v16 = vsel %vm299_vm0, %v648_v15, 0  ;;  %v649_v17 = vld [vmem:[%s213_s9] sm:$0xff]   ;;  %vm233_vm2 = vcmask 7168   ;;  %s531_s4 = sshll.u32 %s933_s30, 3 }
  0x18   : > { %234 = vst.msk [vmem:[#allocation2] sm:$0xff] %vm233_vm2, %v736_v1  ;;  %235 = vst.msk [vmem:[#allocation2 + $0x8] sm:$0xff] %vm233_vm2, %v736_v1  ;;  %v738_v26 = vmov 0   ;;  %s225_s7 = scalar_lea.vmem %s921_s2, %s531_s4  ;;  %s527_s9 = sshll.u32 %s206_s8, 4 }
  0x19   : > { %639 = vset.pattern.permute.xlu1 %v738_v26  ;;  %640 = vset.pattern.permute.xlu0 %v738_v26  ;;  %v394_v38 = vld [vmem:[%s225_s7] sm:$0xff]  ;;  %v395_v42 = vld [vmem:[%s225_s7 + $0x8] sm:$0xff]  ;;  %s208_s10 = scalar_lea.vmem [#allocation3], %s527_s9 }
  0x1a   : > { %s424_s30 = sshll.u32 %s208_s10, 4  ;;  %s867_s30 = int_to_ptr.vmem [resolvable:$true] %s424_s30 }
  0x1b   : > { %s658_s26 = scalar_lea.vmem %s867_s30, 256  ;;  %p665_p1 = scmp.lt.s32.totalorder %s867_s30, %s663_s27 }
  0x1c   : > { %p659_p12 = scmp.ne.s32.totalorder %s867_s30, %s658_s26  ;;  %p666_p2 = scmp.lt.s32.totalorder %s664_s28, %s658_s26 }
  0x1e   : > { %562 = vmatpush3.bf16.xpose.msra.mxu0 %v322_v4  ;;  %p660_p13 = pnand %p659_p12, %p802_p4  ;;  %p667_p3 = por %p666_p2, %p665_p1 }
  0x1f   : > { %563 = vmatprep.subr.bf16.mxu0 %v736_v1  ;;  %v368_v27 = vld [vmem:[#allocation2] sm:$0xff]  ;;  %v369_v30 = vld [vmem:[#allocation2 + $0x8] sm:$0xff] }
  0x20   : > { %p661_p0 = pneg %p660_p13 }
  0x22   : > { %p668_p5 = pnand %p667_p3, %p661_p0 }
  0x26   : > { %564 = vmatpush3.bf16.xpose.msra.mxu0 %v319_v6 }
  0x27   : > { %565 = vmatprep.subr.bf16.mxu0 %v736_v1 }
  0x2e   : > { %566 = vmatpush3.bf16.xpose.msra.mxu0 %v316_v8 }
  0x2f   : > { %567 = vmatprep.subr.bf16.mxu0 %v736_v1 }
  0x36   : > { %568 = vmatpush3.bf16.xpose.msra.mxu0 %v313_v10 }
  0x37   : > { %569 = vmatprep.subr.bf16.mxu0 %v736_v1 }
  0x3e   : > { %570 = vmatpush3.bf16.xpose.msra.mxu0 %v310_v12 }
  0x3f   : > { %571 = vmatprep.subr.bf16.mxu0 %v736_v1 }
  0x46   : > { %572 = vmatpush3.bf16.xpose.msra.mxu0 %v307_v14 }
  0x47   : > { %573 = vmatprep.subr.bf16.mxu0 %v736_v1 }
  0x4e   : > { %574 = vmatpush3.bf16.xpose.msra.mxu0 %v304_v16 }
  0x55   : > { %576 = vmatmul.mubr.msk.bf16.vlgmr.msra.gmra.mxu0 %vm299_vm0, %v649_v17 }
 0x115   : > { %v361_v18 = vpop.f32.mrf.mxu0 }
 0x116   : > { %v370_v19 = vmul.f32 1.442695, %v361_v18 }
 0x117   : > { %v577_v20 = vpop.f32.mrf.mxu0 }
 0x118   : > { %650 = vpow2.f32 %v370_v19 }
 0x119   : > { %v364_v21 = vpop.f32.mrf.mxu0 }
 0x11a   : > { %v372_v22 = vmul.f32 1.442695, %v364_v21 }
 0x11b   : > { %v578_v23 = vpop.f32.mrf.mxu0 }
 0x11c   : > { %652 = vpow2.f32 %v372_v22 }
 0x125   : > { %v651_v24 = vpop.eup %650 }
 0x126   : > { %374 = vadd.xlane.f32.xlu0 %v651_v24 }
 0x129   : > { %v653_v25 = vpop.eup %652 }
 0x12a   : > { %376 = vadd.xlane.f32.xlu0 %v653_v25 }
 0x1af   : > { %v375_v28 = vpop.xlane.xlu0 %374 }
 0x1b0   : > { %v378_v29 = vadd.f32 %v375_v28, %v368_v27 }
 0x1b2   : > { %381 = vst.msk [vmem:[#allocation2] sm:$0xff] %vm233_vm2, %v378_v29 }
 0x1b3   : > { %v377_v31 = vpop.xlane.xlu0 %376 }
 0x1b4   : > { %v379_v32 = vadd.f32 %v377_v31, %v369_v30 }
 0x1b6   : > { %382 = vst.msk [vmem:[#allocation2 + $0x8] sm:$0xff] %vm233_vm2, %v379_v32 }
 0x1b9   : > { %v386_v33 = vld [vmem:[#allocation2] sm:$0xff] }
 0x1ba   : > { %v542_v34 = vadd.f32 -119.38905, %v386_v33 }
 0x1bc   : > { %654 = vlog2.f32 %v542_v34 }
 0x1bd   : > { %v387_v35 = vld [vmem:[#allocation2 + $0x8] sm:$0xff] }
 0x1be   : > { %v543_v36 = vadd.f32 -119.38905, %v387_v35 }
 0x1c0   : > { %656 = vlog2.f32 %v543_v36 }
 0x1c9   : > { %v655_v37 = vpop.eup %654 }
 0x1ca   : > { %v391_v39 = vmul.f32 0.6931472, %v655_v37 }
 0x1cc   : > { %v396_v40 = vsub.f32 %v391_v39, %v394_v38 }
 0x1cd   : > { %v657_v41 = vpop.eup %656 }
 0x1ce   : > { %400 = vperm.xlu1 %639, %v396_v40   ;;  %v393_v43 = vmul.f32 0.6931472, %v657_v41 }
 0x1d0   : > { %v397_v44 = vsub.f32 %v393_v43, %v395_v42 }
 0x1d2   : > { %405 = vperm.xlu1 %639, %v397_v44  }
 0x249   : > { %v401_v45 = vpop.permute.xlu1 %400 }
 0x24a   : > { %408 = vst [vmem:[%s208_s10] sm:$0xff] %v401_v45 }
 0x24d   : > { %v406_v46 = vpop.permute.xlu1 %405 }
 0x24e   : > { %409 = vst [vmem:[%s208_s10 + $0x8] sm:$0xff] %v406_v46 }
 0x24f   : > { %671 = shalt.err (!%p668_p5)
}
 0x250   : > { %s672_s29 = scalar_lea.hbm %s872_s21, 256  ;;  %s676_s6 = scalar_lea.hbm %s922_s3, 2048 }
 0x251   : > { %p673_p6 = scmp.ne.s32.totalorder %s872_s21, %s672_s29  ;;  %p677_p10 = scmp.lt.s32.totalorder %s872_s21, %s922_s3 }
 0x252   : > { %p678_p11 = scmp.lt.s32.totalorder %s676_s6, %s672_s29 }
 0x253   : > { %p674_p7 = pnand %p673_p6, %p802_p4 }
 0x254   : > { %p679_p12 = por %p678_p11, %p677_p10 }
 0x255   : > { %p675_p9 = pneg %p674_p7 }
 0x257   : > { %p680_p13 = pnand %p679_p12, %p675_p9 }
 0x259   : > { %683 = shalt.err (!%p680_p13)
}
 0x25a   : > { %s740_s9 = smov 128   ;;  %s741_s10 = smov 8  }
 0x25b   : > { %579 = dma.vmem_to_hbm [thread:$0]  (%p802_p4), %s867_s30, 256, %s872_s21, %s874_s23, %s740_s9, %s740_s9, %s741_s10  }
 0x25c PF: > { %p585_p0 = scmp.ge.s32.totalorder %s734_s17, 2  ;;  %s439_s11 = sand.u32 1, %s714_s12  }
 0x25d   : > { %s440_s18 = scalar_lea.sflag [#allocation4], %s439_s11 }
 0x25e   : > { %p582_p1 = pnand %p585_p0, %p809_p8 }
 0x260   : > { %p583_p2 = pneg %p582_p1 }
 0x262   : > { %709 = dma.done.wait (%p583_p2), %s440_s18, 256  }
 0x263   : > { %711 = vsyncadd (%p583_p2), %s440_s18, 4294967040  ;;  %s16_s17 = sadd.s32 1, %s734_s17   ;;  %s925_s12 = smov %s718_s13 }
 0x264   : > { %p13_p3 = scmp.ge.s32.totalorder %s16_s17, 10   ;;  %s926_s13 = smov %s722_s14 }
 0x265   : > { %s927_s14 = smov %s815_s25  ;;  %s928_s15 = smov %s730_s16 }
 0x266   : > { %s929_s16 = smov %s931_s20  ;;  %15 = sbr.rel (!%p13_p3) target bundleno = 4 (0x4), region = 81 }
 0x26b   :  { %445 = vsyncpa [#allocation4], 1 }
 0x26c   :  { %447 = vsyncpa [#allocation4 + $0x1], 1 }

</bundles_post_ra>
